<compile_context>
chip_gen: v7x
topology: tpu7x:2x2x1
jax: 0.10.0
libtpu: 0.0.40
codegen_flags: <defaults>
</compile_context>

<pallas_src>
import functools

import jax
import jax.numpy as jnp
from jax import lax
from jax.experimental import pallas as pl
from jax.experimental.pallas import tpu as pltpu

EPSILON = 1e-07


def _colearn_kernel(rgb_ref, hsi_ref, we_ref, w_ref, out_ref, g_ref, *scratch,
                    matmul_dtype, approx_recip, fast_exp, acc_in_out):
    # rgb_ref : (1, C, TQ)   query-row tile of df_rgb_flat
    # hsi_ref : (1, C, HW)   full df_hsi_flat for this batch (resident per batch)
    # we_ref  : (C, C)       linear_e weight (y = x @ We^T)
    # w_ref   : (1, C, C)    per-batch learnable weight
    # out_ref : (1, C, HW)   att for this batch (resident across row tiles)
    # g_ref   : (C, HW)      VMEM scratch holding G = (We^T @ Wb) @ Hf
    # scratch : optional f32 (C, HW) accumulator (only when output is not f32)
    n = pl.program_id(1)
    acc_ref = None if acc_in_out else scratch[0]

    @pl.when(n == 0)
    def _init():
        # Hoisted, row-tile-invariant part of the chain (once per batch):
        #   G = (We^T @ Wb) @ Hf
        we_m = we_ref[...].astype(matmul_dtype)
        wb_m = w_ref[0].astype(matmul_dtype)
        hf_m = hsi_ref[0].astype(matmul_dtype)
        m = lax.dot_general(we_m, wb_m, (((0,), (0,)), ((), ())),
                            preferred_element_type=jnp.float32)        # (C, C) = We^T @ Wb
        g = jnp.dot(m.astype(matmul_dtype), hf_m,
                    preferred_element_type=jnp.float32)                 # (C, HW)
        g_ref[...] = g.astype(g_ref.dtype)
        if acc_in_out:
            out_ref[...] = jnp.zeros_like(out_ref)
        else:
            acc_ref[...] = jnp.zeros_like(acc_ref)

    r = rgb_ref[0]                                   # (C, TQ)
    r = jnp.where(jnp.isnan(r), EPSILON, r)          # torch: df_rgb[nan_mask] = eps
    r_m = r.astype(matmul_dtype)

    # S tile = R_tile^T @ G   (transposed-lhs contraction, no explicit .T)
    s = lax.dot_general(r_m, g_ref[...], (((0,), (0,)), ((), ())),
                        preferred_element_type=jnp.float32)             # (TQ, HW)

    # Softmax over keys; exp without max-subtraction (matches torch).
    s_dtype = matmul_dtype if fast_exp else jnp.float32
    e = jnp.exp(s.astype(s_dtype))                                      # bf16 EUP on fast path
    norm = jnp.sum(e, axis=-1, keepdims=True).astype(jnp.float32)       # (TQ, 1)
    if approx_recip:
        inv = pl.reciprocal(norm, approx=True)                          # EUP vrcp
    else:
        inv = 1.0 / norm

    # Fold 1/norm into the R tile columns (C*TQ mults) instead of scaling the
    # full (TQ, HW) E tile.  The (TQ,1)->(1,TQ) relayout is TQ elements only.
    inv_row = jnp.transpose(inv)                                        # (1, TQ)
    r_scaled = (r * inv_row).astype(matmul_dtype)                       # (C, TQ)

    contrib = jnp.dot(r_scaled, e.astype(matmul_dtype),
                      preferred_element_type=jnp.float32)               # (C, HW)
    if acc_in_out:
        out_ref[0] += contrib            # output block is resident across n
    else:
        acc_ref[...] += contrib

    @pl.when(n == pl.num_programs(1) - 1)
    def _finalize():
        att = out_ref[0] if acc_in_out else acc_ref[...]
        # torch: nan_mask = torch.isnan(att); att[nan_mask] = 0.0
        out_ref[0] = jnp.where(jnp.isnan(att), 0.0, att).astype(out_ref.dtype)


def _vmem_capacity_bytes():
    try:
        return int(pltpu.get_tpu_info().vmem_capacity_bytes)
    except Exception:
        return 64 << 20   # conservative fallback (v7x-sized)


def _plan_tiles(hw, c, in_dtype, out_dtype, matmul_dtype, q_tile=None):
    """Generation-aware query-tile size + VMEM request."""
    in_it = jnp.dtype(in_dtype).itemsize
    out_it = jnp.dtype(out_dtype).itemsize
    md_it = jnp.dtype(matmul_dtype).itemsize
    acc_in_out = jnp.dtype(out_dtype) == jnp.dtype(jnp.float32)

    cap = _vmem_capacity_bytes()
    if cap <= (64 << 20):                      # v7x-class part
        usable = cap - (8 << 20)
    else:                                      # v5e / v6e (128 MiB)
        usable = min(cap - (16 << 20), 112 << 20)

    def est(tq):
        fixed = (2 * c * hw * in_it            # df_hsi block (double-buffered)
                 + 2 * c * hw * out_it         # output block (double-buffered)
                 + 4 * c * c * in_it           # We + per-batch Wb blocks
                 + c * hw * md_it              # G scratch
                 + (0 if acc_in_out else c * hw * 4)
                 + (2 << 20))                  # compiler / vreg slack
        per_row = 2 * c * in_it                # rgb query tile (double-buffered)
        live = 3 * hw * 4                      # live S / exp(S) temps (f32-sized, conservative)
        return fixed + tq * (per_row + live)

    if q_tile is None:
        if est(hw) <= usable:
            q_tile = hw                        # single tile: no per-step overhead
        else:
            q_tile = None
            t = (hw // 128) * 128
            while t >= 128:
                if hw % t == 0 and est(t) <= usable:
                    q_tile = t
                    break
                t -= 128
            if q_tile is None:
                # No 128-aligned divisor fits; fall back to the full extent.
                # (For very large, non-128-aligned HW, pad HW upstream.)
                q_tile = hw

    vmem_limit = int(min(max(est(q_tile), 32 << 20), cap - (2 << 20)))
    return q_tile, vmem_limit, acc_in_out


def colearning_layer_pallas(df_hsi, df_rgb, weight, linear_e_weight,
                            *, matmul_dtype=None, approx_reciprocal=False,
                            fast_exp=None, q_tile=None):
    """df_hsi, df_rgb: (B, C, H, W); weight: (B, C, C); linear_e_weight: (C, C).

    matmul_dtype=jnp.bfloat16 (+ fast_exp + approx_reciprocal) is the
    recommended production setting on all TPU generations (v5e included);
    the default keeps exact f32 arithmetic.
    """
    B, C, H, W = df_hsi.shape
    HW = H * W
    if matmul_dtype is None:
        matmul_dtype = df_hsi.dtype
    if fast_exp is None:
        fast_exp = jnp.dtype(matmul_dtype) == jnp.dtype(jnp.bfloat16)

    q_tile, vmem_limit, acc_in_out = _plan_tiles(
        HW, C, df_hsi.dtype, df_hsi.dtype, matmul_dtype, q_tile=q_tile)
    assert HW % q_tile == 0, (HW, q_tile)
    num_tiles = HW // q_tile

    hsi_flat = df_hsi.reshape(B, C, HW)
    rgb_flat = df_rgb.reshape(B, C, HW)

    kernel = functools.partial(_colearn_kernel,
                               matmul_dtype=matmul_dtype,
                               approx_recip=approx_reciprocal,
                               fast_exp=fast_exp,
                               acc_in_out=acc_in_out)

    scratch_shapes = [pltpu.VMEM((C, HW), matmul_dtype)]          # G
    if not acc_in_out:
        scratch_shapes.append(pltpu.VMEM((C, HW), jnp.float32))   # accumulator

    out = pl.pallas_call(
        kernel,
        out_shape=jax.ShapeDtypeStruct((B, C, HW), df_hsi.dtype),
        grid_spec=pltpu.PrefetchScalarGridSpec(
            num_scalar_prefetch=0,
            grid=(B, num_tiles),
            in_specs=[
                pl.BlockSpec((1, C, q_tile), lambda b, n: (b, 0, n)),   # df_rgb row tile
                pl.BlockSpec((1, C, HW), lambda b, n: (b, 0, 0)),       # df_hsi (per batch)
                pl.BlockSpec((C, C), lambda b, n: (0, 0)),              # linear_e weight
                pl.BlockSpec((1, C, C), lambda b, n: (b, 0, 0)),        # per-batch weight
            ],
            out_specs=pl.BlockSpec((1, C, HW), lambda b, n: (b, 0, 0)),
            scratch_shapes=scratch_shapes,
        ),
        compiler_params=pltpu.CompilerParams(
            dimension_semantics=("parallel", "arbitrary"),
            vmem_limit_bytes=vmem_limit),
    )(rgb_flat, hsi_flat, linear_e_weight, weight)

    return out.reshape(B, C, H, W)


def colearning_layer_ref(df_hsi, df_rgb, weight, linear_e_weight):
    """Pure-JAX reference mirroring the PyTorch forward (original op order)."""
    B, C, H, W = df_hsi.shape
    HW = H * W
    rgb = jnp.where(jnp.isnan(df_rgb), EPSILON, df_rgb)
    rgb_flat = rgb.reshape(B, C, HW)
    rgb_t = jnp.swapaxes(rgb_flat, 1, 2)                       # (B, HW, C)
    corr = jnp.einsum("bnc,dc->bnd", rgb_t, linear_e_weight)   # linear (no bias)
    hsi_flat = df_hsi.reshape(B, C, HW)
    S = jnp.einsum("bnc,bcd->bnd", corr, weight)
    S = jnp.einsum("bnc,bcm->bnm", S, hsi_flat)
    E = jnp.exp(S)
    A = E / jnp.sum(E, axis=2, keepdims=True)
    att = jnp.einsum("bcn,bnm->bcm", rgb_flat, A)
    att = jnp.where(jnp.isnan(att), 0.0, att)
    return att.reshape(B, C, H, W)


if __name__ == "__main__":
    # Small shapes consistent with the module: bz (batch) = 2, channel = 32, 8x8 spatial.
    B, C, H, W = 2, 32, 8, 8

    key = jax.random.PRNGKey(0)
    k_hsi, k_rgb, k_lin = jax.random.split(key, 3)

    df_hsi = 0.1 * jax.random.normal(k_hsi, (B, C, H, W), dtype=jnp.float32)
    df_rgb = 0.1 * jax.random.normal(k_rgb, (B, C, H, W), dtype=jnp.float32)
    # Inject NaNs into df_rgb to exercise the nan-mask path.
    df_rgb = df_rgb.at[0, 0, 0, 0].set(jnp.nan)
    df_rgb = df_rgb.at[1, 3, 2, 5].set(jnp.nan)

    # Parameters (deterministic init, as in __init__):
    weight = jnp.full((B, C, C), 0.001, dtype=jnp.float32)
    bound = 1.0 / jnp.sqrt(C)
    linear_e_weight = jax.random.uniform(
        k_lin, (C, C), dtype=jnp.float32, minval=-bound, maxval=bound)

    ref = colearning_layer_ref(df_hsi, df_rgb, weight, linear_e_weight)

    # Exact path: f32 MXU operands, exact reciprocal, f32 exp.
    out = colearning_layer_pallas(df_hsi, df_rgb, weight, linear_e_weight)
    out = jax.block_until_ready(out)
    assert jnp.all(jnp.isfinite(out)), "non-finite output (f32 path)"
    assert jnp.allclose(out, ref, atol=2e-5, rtol=1e-4), "mismatch vs reference (f32 path)"

    # Fast path (all generations): bf16 MXU operands (f32 accumulation),
    # bf16 exp on the EUP, approx EUP reciprocal.
    out_fast = colearning_layer_pallas(
        df_hsi, df_rgb, weight, linear_e_weight,
        matmul_dtype=jnp.bfloat16, approx_reciprocal=True, fast_exp=True)
    out_fast = jax.block_until_ready(out_fast)
    assert jnp.all(jnp.isfinite(out_fast)), "non-finite output (bf16 path)"
    assert jnp.allclose(out_fast, ref, atol=5e-3, rtol=5e-2), "mismatch vs reference (bf16 path)"

    print("KERNEL_OK")
</pallas_src>

<mosaic_0001>
module attributes {stable_mosaic.version = 11 : i64} {
  func.func @_colearn_kernel(%arg0: i32, %arg1: i32, %arg2: memref<1x32x64xf32, #tpu.memory_space<vmem>>, %arg3: memref<1x32x64xf32, #tpu.memory_space<vmem>>, %arg4: memref<32x32xf32, #tpu.memory_space<vmem>>, %arg5: memref<1x32x32xf32, #tpu.memory_space<vmem>>, %arg6: memref<1x32x64xf32, #tpu.memory_space<vmem>>, %arg7: memref<32x64xf32, #tpu.memory_space<vmem>>) attributes {dimension_semantics = [#tpu.dimension_semantics<parallel>, #tpu.dimension_semantics<arbitrary>], iteration_bounds = array<i64: 2, 1>, scalar_prefetch = 0 : i64, scratch_operands = 1 : i64, tpu.core_type = #tpu.core_type<tc>, window_params = [{transform_indices = @transform_0, window_bounds = array<i64: 1, 32, 64>}, {transform_indices = @transform_1, window_bounds = array<i64: 1, 32, 64>}, {pipeline_mode = #tpu.pipeline_mode<synchronous>, transform_indices = @transform_2, window_bounds = array<i64: 32, 32>}, {transform_indices = @transform_3, window_bounds = array<i64: 1, 32, 32>}, {transform_indices = @transform_4, window_bounds = array<i64: 1, 32, 64>}]} {
    %c0_i32 = arith.constant 0 : i32
    %0 = arith.cmpi eq, %arg1, %c0_i32 : i32
    %1 = arith.extui %0 : i1 to i32
    %c0_i32_0 = arith.constant 0 : i32
    %2 = arith.cmpi ne, %1, %c0_i32_0 : i32
    scf.if %2 {
      %c0_17 = arith.constant 0 : index
      %c0_18 = arith.constant 0 : index
      %28 = vector.load %arg4[%c0_17, %c0_18] : memref<32x32xf32, #tpu.memory_space<vmem>>, vector<32x32xf32>
      %c0_19 = arith.constant 0 : index
      %c0_20 = arith.constant 0 : index
      %c0_21 = arith.constant 0 : index
      %29 = vector.load %arg5[%c0_19, %c0_20, %c0_21] : memref<1x32x32xf32, #tpu.memory_space<vmem>>, vector<1x32x32xf32>
      %30 = vector.shape_cast %29 : vector<1x32x32xf32> to vector<32x32xf32>
      %c0_22 = arith.constant 0 : index
      %c0_23 = arith.constant 0 : index
      %c0_24 = arith.constant 0 : index
      %31 = vector.load %arg3[%c0_22, %c0_23, %c0_24] : memref<1x32x64xf32, #tpu.memory_space<vmem>>, vector<1x32x64xf32>
      %32 = vector.shape_cast %31 : vector<1x32x64xf32> to vector<32x64xf32>
      %cst_25 = arith.constant dense<0.000000e+00> : vector<32x32xf32>
      %33 = tpu.matmul %28, %30, %cst_25 {dimension_numbers = #tpu.dot_dimension_numbers<[0], [0], [1], [1], [0, 1, 1, 1], [], []>} : vector<32x32xf32>, vector<32x32xf32>, vector<32x32xf32> -> vector<32x32xf32>
      %cst_26 = arith.constant dense<0.000000e+00> : vector<32x64xf32>
      %34 = tpu.matmul %33, %32, %cst_26 {dimension_numbers = #tpu.dot_dimension_numbers<[1], [0], [0], [1], [0, 0, 1, 1], [], []>} : vector<32x32xf32>, vector<32x64xf32>, vector<32x64xf32> -> vector<32x64xf32>
      %c0_27 = arith.constant 0 : index
      %c0_28 = arith.constant 0 : index
      %35 = vector.load %arg7[%c0_27, %c0_28] : memref<32x64xf32, #tpu.memory_space<vmem>>, vector<32x64xf32>
      tpu.vector_store %arg7[%c0_27, %c0_28], %34 {strides = array<i32>} : memref<32x64xf32, #tpu.memory_space<vmem>>, vector<32x64xf32>,
      %cst_29 = arith.constant 0.000000e+00 : f32
      %36 = vector.broadcast %cst_29 : f32 to vector<1x32x64xf32>
      %c0_30 = arith.constant 0 : index
      %c0_31 = arith.constant 0 : index
      %c0_32 = arith.constant 0 : index
      %37 = vector.load %arg6[%c0_30, %c0_31, %c0_32] : memref<1x32x64xf32, #tpu.memory_space<vmem>>, vector<1x32x64xf32>
      tpu.vector_store %arg6[%c0_30, %c0_31, %c0_32], %36 {strides = array<i32>} : memref<1x32x64xf32, #tpu.memory_space<vmem>>, vector<1x32x64xf32>,
    } else {
    }
    %c0 = arith.constant 0 : index
    %c0_1 = arith.constant 0 : index
    %c0_2 = arith.constant 0 : index
    %3 = vector.load %arg2[%c0, %c0_1, %c0_2] : memref<1x32x64xf32, #tpu.memory_space<vmem>>, vector<1x32x64xf32>
    %4 = vector.shape_cast %3 : vector<1x32x64xf32> to vector<32x64xf32>
    %5 = arith.cmpf one, %4, %4 : vector<32x64xf32>
    %cst = arith.constant 1.000000e-07 : f32
    %6 = vector.broadcast %cst : f32 to vector<32x64xf32>
    %7 = arith.select %5, %6, %4 : vector<32x64xi1>, vector<32x64xf32>
    %c0_3 = arith.constant 0 : index
    %c0_4 = arith.constant 0 : index
    %8 = vector.load %arg7[%c0_3, %c0_4] : memref<32x64xf32, #tpu.memory_space<vmem>>, vector<32x64xf32>
    %cst_5 = arith.constant dense<0.000000e+00> : vector<64x64xf32>
    %9 = tpu.matmul %7, %8, %cst_5 {dimension_numbers = #tpu.dot_dimension_numbers<[0], [0], [1], [1], [0, 1, 1, 1], [], []>} : vector<32x64xf32>, vector<32x64xf32>, vector<64x64xf32> -> vector<64x64xf32>
    %10 = math.exp %9 : vector<64x64xf32>
    %cst_6 = arith.constant dense<0.000000e+00> : vector<64xf32>
    %11 = vector.multi_reduction <add>, %10, %cst_6 [1] : vector<64x64xf32> to vector<64xf32>
    %12 = vector.shape_cast %11 : vector<64xf32> to vector<64x1xf32>
    %cst_7 = arith.constant 1.000000e+00 : f32
    %13 = vector.broadcast %cst_7 : f32 to vector<64x1xf32>
    %14 = arith.divf %13, %12 : vector<64x1xf32>
    %15 = tpu.transpose %14, [1, 0] : vector<64x1xf32> -> vector<1x64xf32>
    %16 = vector.broadcast %15 : vector<1x64xf32> to vector<32x64xf32>
    %17 = arith.mulf %7, %16 : vector<32x64xf32>
    %cst_8 = arith.constant dense<0.000000e+00> : vector<32x64xf32>
    %18 = tpu.matmul %17, %10, %cst_8 {dimension_numbers = #tpu.dot_dimension_numbers<[1], [0], [0], [1], [0, 0, 1, 1], [], []>} : vector<32x64xf32>, vector<64x64xf32>, vector<32x64xf32> -> vector<32x64xf32>
    %c0_9 = arith.constant 0 : index
    %c0_10 = arith.constant 0 : index
    %c0_11 = arith.constant 0 : index
    %19 = vector.load %arg6[%c0_9, %c0_10, %c0_11] : memref<1x32x64xf32, #tpu.memory_space<vmem>>, vector<1x32x64xf32>
    %20 = vector.shape_cast %19 : vector<1x32x64xf32> to vector<32x64xf32>
    %21 = arith.addf %20, %18 : vector<32x64xf32>
    %c0_12 = arith.constant 0 : index
    %c0_13 = arith.constant 0 : index
    %c0_14 = arith.constant 0 : index
    %22 = vector.load %arg6[%c0_12, %c0_13, %c0_14] : memref<1x32x64xf32, #tpu.memory_space<vmem>>, vector<1x32x64xf32>
    %23 = vector.shape_cast %22 : vector<1x32x64xf32> to vector<32x64xf32>
    %24 = vector.shape_cast %21 : vector<32x64xf32> to vector<1x32x64xf32>
    tpu.vector_store %arg6[%c0_12, %c0_13, %c0_14], %24 {strides = array<i32>} : memref<1x32x64xf32, #tpu.memory_space<vmem>>, vector<1x32x64xf32>,
    %c0_i32_15 = arith.constant 0 : i32
    %25 = arith.cmpi eq, %arg1, %c0_i32_15 : i32
    %26 = arith.extui %25 : i1 to i32
    %c0_i32_16 = arith.constant 0 : i32
    %27 = arith.cmpi ne, %26, %c0_i32_16 : i32
    scf.if %27 {
      %c0_17 = arith.constant 0 : index
      %c0_18 = arith.constant 0 : index
      %c0_19 = arith.constant 0 : index
      %28 = vector.load %arg6[%c0_17, %c0_18, %c0_19] : memref<1x32x64xf32, #tpu.memory_space<vmem>>, vector<1x32x64xf32>
      %29 = vector.shape_cast %28 : vector<1x32x64xf32> to vector<32x64xf32>
      %30 = arith.cmpf one, %29, %29 : vector<32x64xf32>
      %cst_20 = arith.constant 0.000000e+00 : f32
      %31 = vector.broadcast %cst_20 : f32 to vector<32x64xf32>
      %32 = arith.select %30, %31, %29 : vector<32x64xi1>, vector<32x64xf32>
      %c0_21 = arith.constant 0 : index
      %c0_22 = arith.constant 0 : index
      %c0_23 = arith.constant 0 : index
      %33 = vector.load %arg6[%c0_21, %c0_22, %c0_23] : memref<1x32x64xf32, #tpu.memory_space<vmem>>, vector<1x32x64xf32>
      %34 = vector.shape_cast %33 : vector<1x32x64xf32> to vector<32x64xf32>
      %35 = vector.shape_cast %32 : vector<32x64xf32> to vector<1x32x64xf32>
      tpu.vector_store %arg6[%c0_21, %c0_22, %c0_23], %35 {strides = array<i32>} : memref<1x32x64xf32, #tpu.memory_space<vmem>>, vector<1x32x64xf32>,
    } else {
    }
    return
  }
  func.func @transform_0(%arg0: i32, %arg1: i32) -> (i32, i32, i32) {
    %c0_i32 = arith.constant 0 : i32
    %c0_i32_0 = arith.constant 0 : i32
    return %arg0, %c0_i32, %arg1 : i32, i32, i32
  }
  func.func @transform_1(%arg0: i32, %arg1: i32) -> (i32, i32, i32) {
    %c0_i32 = arith.constant 0 : i32
    %c0_i32_0 = arith.constant 0 : i32
    %c0_i32_1 = arith.constant 0 : i32
    return %arg0, %c0_i32, %c0_i32_0 : i32, i32, i32
  }
  func.func @transform_2(%arg0: i32, %arg1: i32) -> (i32, i32) {
    %c0_i32 = arith.constant 0 : i32
    %c0_i32_0 = arith.constant 0 : i32
    %c0_i32_1 = arith.constant 0 : i32
    return %c0_i32, %c0_i32_0 : i32, i32
  }
  func.func @transform_3(%arg0: i32, %arg1: i32) -> (i32, i32, i32) {
    %c0_i32 = arith.constant 0 : i32
    %c0_i32_0 = arith.constant 0 : i32
    %c0_i32_1 = arith.constant 0 : i32
    return %arg0, %c0_i32, %c0_i32_0 : i32, i32, i32
  }
  func.func @transform_4(%arg0: i32, %arg1: i32) -> (i32, i32, i32) {
    %c0_i32 = arith.constant 0 : i32
    %c0_i32_0 = arith.constant 0 : i32
    %c0_i32_1 = arith.constant 0 : i32
    return %arg0, %c0_i32, %c0_i32_0 : i32, i32, i32
  }
}

</mosaic_0001>

<bundles_post_ra>
// kernel: tpu_custom_call.1
= control target key start
LH: loop header
LB: loop body
LE: loop exit
PB: predicated region body
PF: predicated region fallthrough
CT: control target
= control target key end

     0   :  { %s2118_s0 = inlined_call_operand.hbm [shape: f32[2,32,64], index: 0, kind: input, shape index: {}]   ;;  %s2119_s1 = inlined_call_operand.hbm [shape: f32[2,32,64], index: 1, kind: input, shape index: {}]   ;;  %s2120_s2 = inlined_call_operand.hbm [shape: f32[32,32], index: 2, kind: input, shape index: {}]   ;;  %s2121_s3 = inlined_call_operand.hbm [shape: f32[2,32,32], index: 3, kind: input, shape index: {}]   ;;  %s2122_s4 = inlined_call_operand.hbm [shape: f32[2,32,64], index: 4, kind: output, shape index: {}]  }
   0x1   :  { %2133 = sst [smem:[#allocation20_spill]] %s2118_s0 }
   0x2   :  { %2134 = sst [smem:[#allocation21_spill]] %s2120_s2 }
   0x3   :  { %9 = vsyncpa [#allocation4], 0 }
   0x4   :  { %11 = vsyncpa [#allocation4 + $0x1], 0 }
   0x5   :  { %12 = vsyncpa [#allocation7], 0 }
   0x6   :  { %14 = vsyncpa [#allocation7 + $0x1], 0 }
   0x7   :  { %15 = vsyncpa [#allocation10], 0 }
   0x8   :  { %17 = vsyncpa [#allocation10 + $0x1], 0 }
   0x9   :  { %18 = vsyncpa [#allocation5], 0 }
   0xa   :  { %20 = vsyncpa [#allocation5 + $0x1], 0  ;;  %s1700_s15 = smov 0   ;;  %s1702_s16 = smov 0  }
   0xb   :  { %s1704_s17 = smov 0   ;;  %s1706_s18 = smov 0  }
   0xc   :  { %s1708_s19 = smov 0   ;;  %s1710_s20 = smov 0  }
   0xd LB: > { %2135 = sst [smem:[#allocation17_spill]] %s1659_s19  ;;  %s1731_s21 = sadd.s32 4294967295, %s1663_s20   ;;  %s1663_s20 = sphi %s1710_s20, %s26_s20   ;;  %s1659_s19 = sphi %s1708_s19, %s2161_s19   ;;  %s1655_s18 = sphi %s1706_s18, %s2160_s18   ;;  %s1651_s17 = sphi %s1704_s17, %s2164_s17   ;;  %s1647_s16 = sphi %s1702_s16, %s2163_s16   ;;  %s1643_s15 = sphi %s1700_s15, %s2162_s15  }
   0xe   : > { %s1133_s22 = sadd.s32 4294967294, %s1663_s20   ;;  %p60_p0 = scmp.ne.s32.totalorder %s1647_s16, %s1643_s15 }
   0xf   : > { %p2123_p1 = scmp.eq.s32.totalorder %s1731_s21, 0  ;;  %p163_p3 = scmp.eq.s32.totalorder %s1133_s22, 1 }
  0x10   : > { %p1134_p5 = scmp.ge.s32.totalorder %s1663_s20, 1  ;;  %p170_p7 = scmp.lt.s32.totalorder %s1663_s20, 3 }
  0x11   : > { %p1740_p4 = por %p2123_p1, %p60_p0  ;;  %p1745_p6 = por %p163_p3, %p60_p0 }
  0x12   : > { %p1750_p8 = pnand %p1134_p5, %p170_p7  ;;  %s1665_s26 = smov [#allocation8]  }
  0x13   : > { %s2136_s23 = scalar_select %p1740_p4, 1, 0 }
  0x14   : > { %s2137_s24 = scalar_select %p1745_p6, 1, 0 }
  0x15   : > { %s2138_s25 = scalar_select %p1750_p8, 1, 0 }
  0x16   : > { %s182_s27 = sshll.u32 %s1665_s26, 4  ;;  %p1343_p9 = pneg %p1750_p8  ;;  %s183_s27 = int_to_ptr.vmem [resolvable:$true] %s182_s27 }
  0x17   : > { %s38_s29 = sadd.s32 1, %s1659_s19  ;;  %s2140_s2 = sld [smem:[#allocation21_spill]] }
  0x18   : > { %p1759_p11 = pnand %p1343_p9, %p2123_p1 }
  0x1a   : > { %p1453_p13 = pneg %p1759_p11 }
  0x1d   : > { %s1451_s6 = scalar_lea.hbm %s2140_s2, 512 }
  0x1e   : > { %p1452_p12 = scmp.ne.s32.totalorder %s2140_s2, %s1451_s6  ;;  %p1458_p5 = scmp.lt.u32.totalorder %s1451_s6, %s2140_s2 }
  0x20   : > { %p1454_p0 = pnand %p1453_p13, %p1452_p12 }
  0x22   : > { %p1455_p3 = pneg %p1454_p0 }
  0x24   : > { %p1460_p7 = pnand %p1458_p5, %p1455_p3 }
  0x26   : > { %1463 = shalt.err (!%p1460_p7)
}
  0x27   : > { %s1464_s11 = scalar_lea.vmem %s183_s27, 512  ;;  %p1472_p2 = scmp.lt.s32.totalorder %s183_s27, %s183_s27 }
  0x28   : > { %p1465_p9 = scmp.ne.s32.totalorder %s183_s27, %s1464_s11  ;;  %p1473_p6 = scmp.lt.s32.totalorder %s1464_s11, %s1464_s11 }
  0x2a   : > { %p1467_p10 = pnand %p1465_p9, %p1453_p13  ;;  %p1474_p4 = por %p1473_p6, %p1472_p2 }
  0x2c   : > { %p1468_p1 = pneg %p1467_p10 }
  0x2e   : > { %p1475_p8 = pnand %p1474_p4, %p1468_p1 }
  0x30   : > { %1478 = shalt.err (!%p1475_p8)
}
  0x31   : > { %s2126_s12 = smov 128   ;;  %s2128_s13 = smov 8  }
  0x32   : > { %1346 = dma.hbm_to_vmem [thread:$0]  (!%p1759_p11), %s2140_s2, 512, %s183_s27, [#allocation7], %s2126_s12, %s2126_s12, %s2128_s13  }
  0x33   : > { %p40_p1 = scmp.ge.s32.totalorder %s38_s29, 2  ;;  %s47_s26 = sadd.s32 1, %s1651_s17 }
  0x34   : > { %p54_p2 = scmp.ne.s32.totalorder %s1651_s17, %s1647_s16  ;;  %p55_p4 = scmp.eq.s32.totalorder %s1663_s20, 0 }
  0x35   : > { %s2166_s29 = smov (%p40_p1, %s38_s29), 0  ;;  %p2143_p8 = scmp.eq.s32.totalorder %s1731_s21, 1 }
  0x36   : > { %2141 = sst [smem:[#allocation18_spill]] %s2166_s29  ;;  %p1789_p6 = por %p55_p4, %p54_p2 }
  0x37   : > { %p1795_p10 = por %p2143_p8, %p54_p2  ;;  %s42_s5 = ssub.s32 %s1659_s19, %s2166_s29 }
  0x38   : > { %p1362_p11 = scmp.lt.s32.totalorder %s1663_s20, 2  ;;  %p45_p12 = scmp.eq.s32.totalorder %s42_s5, 0 }
  0x39   : > { %s2144_s28 = scalar_select %p1795_p10, 1, 0 }
  0x3a   : > { %s1803_s27 = sand.u32 1, %s1651_s17   ;;  %s1812_s8 = sshll.u32 %s1659_s19, 9 }
  0x3b   : > { %s1806_s6 = sshll.u32 %s1803_s27, 5  ;;  %s2146_s0 = sld [smem:[#allocation20_spill]] }
  0x3c   : > { %s1809_s7 = scalar_select %p45_p12, %s1651_s17, %s47_s26  }
  0x3d   : > { %s200_s14 = scalar_lea.vmem [#allocation3], %s1806_s6  ;;  %p1825_p13 = pnand %p1362_p11, %p1789_p6 }
  0x3e   : > { %2145 = sst [smem:[#allocation19_spill]] %s1809_s7  ;;  %s208_s22 = sshll.u32 %s200_s14, 4  ;;  %s1821_s22 = int_to_ptr.vmem [resolvable:$true] %s208_s22 }
  0x3f   : > { %s197_s12 = scalar_lea.sflag [#allocation4], %s1803_s27  ;;  %p1835_p3 = pneg %p1825_p13 }
  0x41   : > { %s1818_s11 = scalar_lea.hbm %s2146_s0, %s1812_s8  ;;  %s1484_s14 = scalar_lea.hbm %s2146_s0, 1024 }
  0x42   : > { %s1479_s13 = scalar_lea.hbm %s1818_s11, 512  ;;  %p1485_p9 = scmp.lt.u32.totalorder %s1818_s11, %s2146_s0 }
  0x43   : > { %p1480_p0 = scmp.ne.s32.totalorder %s1818_s11, %s1479_s13  ;;  %p1486_p1 = scmp.lt.u32.totalorder %s1484_s14, %s1479_s13 }
  0x44   : > { %p1488_p4 = scmp.lt.u32.totalorder %s1479_s13, %s1818_s11 }
  0x45   : > { %p1482_p5 = pnand %p1835_p3, %p1480_p0  ;;  %p1487_p2 = por %p1486_p1, %p1485_p9 }
  0x47   : > { %p1483_p7 = pneg %p1482_p5  ;;  %p1489_p6 = por %p1488_p4, %p1487_p2 }
  0x49   : > { %p1490_p8 = pnand %p1489_p6, %p1483_p7 }
  0x4b   : > { %1493 = shalt.err (!%p1490_p8)
}
  0x4c   : > { %s1494_s5 = scalar_lea.vmem %s1821_s22, 512  ;;  %s1668_s10 = smov [#allocation3]  }
  0x4d   : > { %p1495_p11 = scmp.ne.s32.totalorder %s1821_s22, %s1494_s5  ;;  %s1499_s30 = sshll.u32 %s1668_s10, 4  ;;  %s1500_s30 = int_to_ptr.vmem [resolvable:$false] %s1499_s30 }
  0x4e   : > { %s1501_s2 = scalar_lea.vmem %s1500_s30, 1024  ;;  %p1502_p5 = scmp.lt.s32.totalorder %s1821_s22, %s1500_s30 }
  0x4f   : > { %p1497_p12 = pnand %p1495_p11, %p1835_p3  ;;  %p1503_p10 = scmp.lt.s32.totalorder %s1501_s2, %s1494_s5 }
  0x51   : > { %p1498_p0 = pneg %p1497_p12  ;;  %p1504_p9 = por %p1503_p10, %p1502_p5 }
  0x53   : > { %p1505_p1 = pnand %p1504_p9, %p1498_p0 }
  0x55   : > { %1508 = shalt.err (!%p1505_p1)
}
  0x56   : > { %s2149_s29 = smov 8   ;;  %s2150_s13 = smov 128  }
  0x57   : > { %1350 = dma.hbm_to_vmem [thread:$0]  (!%p1825_p13), %s1818_s11, 512, %s1821_s22, %s197_s12, %s2150_s13, %s2150_s13, %s2149_s29  }
  0x58   : > { %s1867_s5 = scalar_lea.hbm %s2119_s1, %s1812_s8  ;;  %s222_s30 = scalar_lea.vmem [#allocation6], %s1806_s6 }
  0x59   : > { %s229_s2 = sshll.u32 %s222_s30, 4  ;;  %s2151_s0 = sand.u32 1, %s1663_s20   ;;  %s1870_s2 = int_to_ptr.vmem [resolvable:$true] %s229_s2 }
  0x5a   : > { %s1874_s19 = scalar_lea.sflag [#allocation7], %s2151_s0  ;;  %s1509_s7 = scalar_lea.hbm %s1867_s5, 512 }
  0x5b   : > { %p1510_p10 = scmp.ne.s32.totalorder %s1867_s5, %s1509_s7  ;;  %s1514_s22 = scalar_lea.hbm %s2119_s1, 1024 }
  0x5c   : > { %p1515_p4 = scmp.lt.u32.totalorder %s1867_s5, %s2119_s1  ;;  %p1516_p6 = scmp.lt.u32.totalorder %s1514_s22, %s1509_s7 }
  0x5d   : > { %p1512_p7 = pnand %p1510_p10, %p1835_p3  ;;  %p1518_p11 = scmp.lt.u32.totalorder %s1509_s7, %s1867_s5 }
  0x5e   : > { %p1517_p8 = por %p1516_p6, %p1515_p4 }
  0x5f   : > { %p1513_p2 = pneg %p1512_p7 }
  0x60   : > { %p1519_p12 = por %p1518_p11, %p1517_p8 }
  0x62   : > { %p1520_p0 = pnand %p1519_p12, %p1513_p2 }
  0x64   : > { %1523 = shalt.err (!%p1520_p0)
}
  0x65   : > { %s1524_s0 = scalar_lea.vmem %s1870_s2, 512  ;;  %s1669_s30 = smov [#allocation6]  }
  0x66   : > { %p1525_p5 = scmp.ne.s32.totalorder %s1870_s2, %s1524_s0  ;;  %s1529_s12 = sshll.u32 %s1669_s30, 4  ;;  %s1530_s12 = int_to_ptr.vmem [resolvable:$false] %s1529_s12 }
  0x67   : > { %s1531_s11 = scalar_lea.vmem %s1530_s12, 1024  ;;  %p1532_p10 = scmp.lt.s32.totalorder %s1870_s2, %s1530_s12 }
  0x68   : > { %p1527_p9 = pnand %p1525_p5, %p1835_p3  ;;  %p1533_p7 = scmp.lt.s32.totalorder %s1531_s11, %s1524_s0 }
  0x6a   : > { %p1528_p1 = pneg %p1527_p9  ;;  %p1534_p4 = por %p1533_p7, %p1532_p10 }
  0x6c   : > { %p1535_p6 = pnand %p1534_p4, %p1528_p1 }
  0x6e   : > { %1538 = shalt.err (!%p1535_p6)
}
  0x6f   : > { %1353 = dma.hbm_to_vmem [thread:$0]  (!%p1825_p13), %s1867_s5, 512, %s1870_s2, %s1874_s19, %s2150_s13, %s2150_s13, %s2149_s29  }
  0x70   : > { %s1905_s14 = scalar_lea.hbm %s2121_s3, %s1812_s8  ;;  %s243_s10 = scalar_lea.vmem [#allocation9], %s1806_s6 }
  0x71   : > { %s250_s0 = sshll.u32 %s243_s10, 4  ;;  %s240_s30 = scalar_lea.sflag [#allocation10], %s1803_s27  ;;  %s1908_s0 = int_to_ptr.vmem [resolvable:$true] %s250_s0 }
  0x72   : > { %s1539_s12 = scalar_lea.hbm %s1905_s14, 512  ;;  %s1544_s2 = scalar_lea.hbm %s2121_s3, 1024 }
  0x73   : > { %p1540_p2 = scmp.ne.s32.totalorder %s1905_s14, %s1539_s12  ;;  %p1545_p12 = scmp.lt.u32.totalorder %s1905_s14, %s2121_s3 }
  0x74   : > { %p1546_p0 = scmp.lt.u32.totalorder %s1544_s2, %s1539_s12  ;;  %p1548_p9 = scmp.lt.u32.totalorder %s1539_s12, %s1905_s14 }
  0x75   : > { %p1542_p8 = pnand %p1540_p2, %p1835_p3 }
  0x76   : > { %p1547_p5 = por %p1546_p0, %p1545_p12 }
  0x77   : > { %p1543_p11 = pneg %p1542_p8 }
  0x78   : > { %p1549_p1 = por %p1548_p9, %p1547_p5 }
  0x7a   : > { %p1550_p10 = pnand %p1549_p1, %p1543_p11 }
  0x7c   : > { %1553 = shalt.err (!%p1550_p10)
}
  0x7d   : > { %s1554_s6 = scalar_lea.vmem %s1908_s0, 512  ;;  %s1670_s7 = smov [#allocation9]  }
  0x7e   : > { %p1555_p7 = scmp.ne.s32.totalorder %s1908_s0, %s1554_s6  ;;  %s1559_s22 = sshll.u32 %s1670_s7, 4  ;;  %s1560_s22 = int_to_ptr.vmem [resolvable:$false] %s1559_s22 }
  0x7f   : > { %s1561_s10 = scalar_lea.vmem %s1560_s22, 1024  ;;  %p1562_p2 = scmp.lt.s32.totalorder %s1908_s0, %s1560_s22 }
  0x80   : > { %p1557_p4 = pnand %p1555_p7, %p1835_p3  ;;  %p1563_p8 = scmp.lt.s32.totalorder %s1561_s10, %s1554_s6 }
  0x82   : > { %p1558_p6 = pneg %p1557_p4  ;;  %p1564_p12 = por %p1563_p8, %p1562_p2 }
  0x84   : > { %p1565_p0 = pnand %p1564_p12, %p1558_p6 }
  0x86   : > { %1568 = shalt.err (!%p1565_p0)
}
  0x87   : > { %1356 = dma.hbm_to_vmem [thread:$0]  (!%p1825_p13), %s1905_s14, 512, %s1908_s0, %s240_s30, %s2150_s13, %s2150_s13, %s2149_s29  }
  0x88   : > { %p2152_p3 = scmp.ne.s32.totalorder %s2138_s25, 0 }
  0x89   : > { %s1940_s9 = sand.u32 (!%p2152_p3), 1, %s1647_s16   ;;  %p2153_p11 = scmp.ne.s32.totalorder (!%p2152_p3), %s2136_s23, 0 }
  0x8a   : > { %262 = sbr.rel (%p2152_p3) target bundleno = 1496 (0x5d8), region = 36  ;;  %s1943_s12 = sshll.u32 (!%p2152_p3), %s1940_s9, 5 }
  0x8b   : > { %s265_s26 = scalar_lea.sflag (!%p2152_p3), [#allocation4], %s1940_s9  ;;  %s1947_s19 = scalar_lea.vmem (!%p2152_p3), [#allocation3], %s1943_s12 }
  0x91   : > { %1622 = dma.done.wait (%p2153_p11), %s265_s26, 512  }
  0x92   : > { %1624 = vsyncadd (%p2153_p11), %s265_s26, 4294966784  ;;  %s273_s25 = sand.u32 1, %s1731_s21   ;;  %s1955_s29 = scalar_lea.vmem [#allocation6], %s1943_s12 }
  0x93   : > { %s274_s27 = scalar_lea.sflag [#allocation7], %s273_s25 }
  0x94   : > { %1626 = dma.done.wait (%p2153_p11), %s274_s27, 512  }
  0x95   : > { %1628 = vsyncadd (%p2153_p11), %s274_s27, 4294966784  ;;  %p2154_p13 = scmp.eq.s32.totalorder %s1731_s21, 0 }
  0x97   : > { %1630 = dma.done.wait (%p2154_p13), [#allocation7], 512   ;;  %p2155_p5 = pmov %p2154_p13 }
  0x98   : > { %s287_s13 = scalar_lea.sflag [#allocation10], %s1940_s9  ;;  %s290_s14 = scalar_lea.vmem [#allocation9], %s1943_s12 }
  0x99   : > { %1632 = vsyncadd (%p2155_p5), [#allocation7], 4294966784 }
  0x9a   : > { %1634 = dma.done.wait (%p2153_p11), %s287_s13, 512  }
  0x9b   : > { %1636 = vsyncadd (%p2153_p11), %s287_s13, 4294966784  ;;  %v329_v0 = vld [vmem:[#allocation8] sm:$0xff]  ;;  %v334_v2 = vld [vmem:[%s290_s14 + $0x8] sm:$0xff]  ;;  %vm373_vm0 = vcmask 261120   ;;  %vm568_vm5 = vcmask 523264   ;;  %s2020_s21 = scalar_lea.vmem [#allocation11], %s1943_s12 }
  0x9c   : > { %341 = vxpose.xlu0.b32.start [1/4] (short) (narrow) %v329_v0, 32  ;;  %v333_v1 = vld [vmem:[%s290_s14] sm:$0xff]  ;;  %v330_v3 = vld [vmem:[#allocation8 + $0x8] sm:$0xff]  ;;  %v335_v5 = vld [vmem:[%s290_s14 + $0x10] sm:$0xff]  ;;  %s1180_s23 = sshll.u32 %s1655_s18, 9  ;;  %s994_s0 = sshll.u32 %s2020_s21, 4  ;;  %s2065_s0 = int_to_ptr.vmem [resolvable:$true] %s994_s0 }
  0x9d   : > { %v1291_v4 = vpack.c.bf16 %v334_v2, %v333_v1  ;;  %v336_v6 = vld [vmem:[%s290_s14 + $0x18] sm:$0xff]  ;;  %v331_v8 = vld [vmem:[#allocation8 + $0x10] sm:$0xff]  ;;  %v337_v10 = vld [vmem:[%s1955_s29] sm:$0xff]  ;;  %s2063_s2 = scalar_lea.hbm %s2122_s4, %s1180_s23  ;;  %s981_s18 = scalar_lea.sflag [#allocation5], %s1940_s9 }
  0x9e   : > { %v1295_v7 = vpack.c.bf16 %v336_v6, %v335_v5  ;;  %v332_v9 = vld [vmem:[#allocation8 + $0x18] sm:$0xff]  ;;  %v338_v11 = vld [vmem:[%s1955_s29 + $0x8] sm:$0xff]  ;;  %v339_v12 = vld [vmem:[%s1955_s29 + $0x10] sm:$0xff]  ;;  %s1569_s8 = scalar_lea.vmem %s2065_s0, 512  ;;  %p2156_p1 = scmp.ne.s32.totalorder %s2144_s28, 0 }
  0x9f   : > { %1292 = vmatprep.subr.bf16.mxu0 %v1291_v4  ;;  %v1299_v13 = vpack.c.bf16 %v338_v11, %v337_v10  ;;  %v340_v14 = vld [vmem:[%s1955_s29 + $0x18] sm:$0xff]  ;;  %v577_v20 = vld [vmem:[%s1947_s19] sm:$0xff]  ;;  %v578_v21 = vld [vmem:[%s1947_s19 + $0x8] sm:$0xff]  ;;  %p1570_p9 = scmp.ne.s32.totalorder %s2065_s0, %s1569_s8  ;;  %s1672_s11 = smov [#allocation11]  }
  0xa0   : > { %342 = vxpose.xlu0.b32.cont [2/4] (short) (narrow) %v330_v3, 32  ;;  %1294 = vmatpush3.bf16.msra.mxu0 %v1291_v4  ;;  %v1303_v15 = vpack.c.bf16 %v340_v14, %v339_v12  ;;  %vm581_vm1 = vcmp.ne.f32.partialorder %v577_v20, %v577_v20  ;;  %vm582_vm2 = vcmp.ne.f32.partialorder %v578_v21, %v578_v21  ;;  %v579_v23 = vld [vmem:[%s1947_s19 + $0x10] sm:$0xff]  ;;  %v580_v25 = vld [vmem:[%s1947_s19 + $0x18] sm:$0xff]  ;;  %s1573_s6 = sshll.u32 %s1672_s11, 4  ;;  %s1574_s6 = int_to_ptr.vmem [resolvable:$false] %s1573_s6 }
  0xa1   : > { %1296 = vmatprep.subr.bf16.mxu0 %v1295_v7  ;;  %1300 = vmatprep.subr.bf16.mxu1 %v1299_v13  ;;  %v1981_v22 = vsel %vm581_vm1, 1e-07, %v577_v20  ;;  %v1985_v24 = vsel %vm582_vm2, 1e-07, %v578_v21  ;;  %vm583_vm3 = vcmp.ne.f32.partialorder %v579_v23, %v579_v23  ;;  %vm584_vm4 = vcmp.ne.f32.partialorder %v580_v25, %v580_v25  ;;  %p1571_p10 = pnand %p1570_p9, %p2156_p1  ;;  %s1575_s7 = scalar_lea.vmem %s1574_s6, 1024 }
  0xa2   : > { %1302 = vmatpush3.bf16.msra.mxu1 %v1299_v13  ;;  %593 = vxpose.xlu1.b32.start [1/4] (short) (narrow) %v1981_v22, 64  ;;  %v1989_v26 = vsel %vm583_vm3, 1e-07, %v579_v23  ;;  %v1992_v27 = vsel %vm584_vm4, 1e-07, %v580_v25  ;;  %p1576_p4 = scmp.lt.s32.totalorder %s2065_s0, %s1574_s6  ;;  %p1577_p6 = scmp.lt.s32.totalorder %s1575_s7, %s1569_s8 }
  0xa3   : > { %1304 = vmatprep.subr.bf16.mxu1 %v1303_v15  ;;  %p1572_p7 = pneg %p1571_p10 }
  0xa4   : > { %343 = vxpose.xlu0.b32.cont [3/4] (short) (narrow) %v331_v8, 32  ;;  %1298 = vmatpush3.bf16.msra.mxu0 %v1295_v7  ;;  %p1578_p2 = por %p1577_p6, %p1576_p4 }
  0xa6   : > { %1306 = vmatpush3.bf16.msra.mxu1 %v1303_v15  ;;  %594 = vxpose.xlu1.b32.cont [2/4] (short) (narrow) %v1985_v24, 64  ;;  %p1579_p8 = pnand %p1578_p2, %p1572_p7 }
  0xa8   : > { %344 = vxpose.xlu0.b32.end [4/4] (short) (narrow) %v332_v9, 32 }
  0xaa   : > { %595 = vxpose.xlu1.b32.cont [3/4] (short) (narrow) %v1989_v26, 64 }
  0xae   : > { %596 = vxpose.xlu1.b32.end [4/4] (short) (narrow) %v1992_v27, 64 }
 0x11c   : > { %v357_v16 = vpop.trf.xlu0 }
 0x11d   : > { %1229 = vmatprep.mubr.msk.f32.mxu0 %vm373_vm0, %v357_v16 }
 0x120   : > { %v358_v17 = vpop.trf.xlu0 }
 0x121   : > { %1230 = vmatmul.mubr.msk.f32.vlgmr.msra.gmra.mrb[0].mxu0 %vm373_vm0, %v358_v17 }
 0x122   : > { %v609_v32 = vpop.trf.xlu1 }
 0x124   : > { %v359_v18 = vpop.trf.xlu0 }
 0x125   : > { %1232 = vmatprep.mubr.msk.f32.mxu0 %vm373_vm0, %v359_v18 }
 0x126   : > { %v610_v33 = vpop.trf.xlu1 }
 0x128   : > { %v360_v19 = vpop.trf.xlu0 }
 0x129   : > { %1233 = vmatmul.mubr.msk.f32.gmra.mrb[2].mxu0 %vm373_vm0, %v360_v19 }
 0x12a   : > { %1257 = vmatprep.mubr.msk.f32.mxu0 %vm373_vm0, %v609_v32  ;;  %v611_v36 = vpop.trf.xlu1 }
 0x12e   : > { %v612_v42 = vpop.trf.xlu1 }
 0x132   : > { %v613_v43 = vpop.trf.xlu1 }
 0x136   : > { %v614_v47 = vpop.trf.xlu1 }
 0x13a   : > { %v615_v48 = vpop.trf.xlu1 }
 0x13e   : > { %v616_v49 = vpop.trf.xlu1 }
 0x1f4   : > { %v1231_v28 = vpop.f32.mrb[0].mxu0 }
 0x1f5   : > { %v452_v29 = vpop.f32.mrb[1].mxu0 }
 0x1f6   : > { %1243 = vmatprep.mubr.msk.f32.mxu1 %vm373_vm0, %v452_v29 }
 0x1f7   : > { %1244 = vmatmul.mubr.msk.f32.vlgmr.msra.gmra.mrb[0].mxu1 %vm373_vm0, %v1231_v28 }
 0x1fc   : > { %v1234_v30 = vpop.f32.mrb[2].mxu0 }
 0x1fd   : > { %v462_v31 = vpop.f32.mrb[3].mxu0 }
 0x1fe   : > { %1246 = vmatprep.mubr.msk.f32.mxu1 %vm373_vm0, %v462_v31 }
 0x1ff   : > { %1247 = vmatmul.mubr.msk.f32.gmra.mrb[2].mxu1 %vm373_vm0, %v1234_v30 }
 0x2ca   : > { %v1245_v34 = vpop.f32.mrb[0].mxu1 }
 0x2cb   : > { %570 = vst.msk [vmem:[#allocation2 + $0x8] sm:$0xff] %vm568_vm5, %v1245_v34  ;;  %v549_v35 = vpop.f32.mrb[1].mxu1 }
 0x2cc   : > { %569 = vst.msk [vmem:[#allocation2] sm:$0xff] %vm568_vm5, %v549_v35 }
 0x2d2   : > { %v1248_v37 = vpop.f32.mrb[2].mxu1  ;;  %v590_v38 = vld [vmem:[#allocation2 + $0x8] sm:$0xff] }
 0x2d3   : > { %572 = vst.msk [vmem:[#allocation2 + $0x18] sm:$0xff] %vm568_vm5, %v1248_v37  ;;  %v559_v39 = vpop.f32.mrb[3].mxu1  ;;  %v589_v40 = vld [vmem:[#allocation2] sm:$0xff]  ;;  %v1671_v37 = vmov 0.0  }
 0x2d4   : > { %571 = vst.msk [vmem:[#allocation2 + $0x10] sm:$0xff] %vm568_vm5, %v559_v39  ;;  %v1307_v41 = vpack.c.bf16 %v590_v38, %v589_v40  ;;  %574 = vst.msk [vmem:[%s2020_s21 + $0x8] sm:$0xff] %vm568_vm5, %v1671_v37 }
 0x2d5   : > { %573 = vst.msk [vmem:[%s2020_s21] sm:$0xff] %vm568_vm5, %v1671_v37  ;;  %575 = vst.msk [vmem:[%s2020_s21 + $0x10] sm:$0xff] %vm568_vm5, %v1671_v37 }
 0x2d6   : > { %1308 = vmatprep.subr.bf16.mxu0 %v1307_v41  ;;  %576 = vst.msk [vmem:[%s2020_s21 + $0x18] sm:$0xff] %vm568_vm5, %v1671_v37 }
 0x2d7   : > { %1310 = vmatpush3.bf16.msra.mxu0 %v1307_v41 }
 0x2da   : > { %v592_v44 = vld [vmem:[#allocation2 + $0x18] sm:$0xff] }
 0x2db   : > { %v591_v45 = vld [vmem:[#allocation2 + $0x10] sm:$0xff] }
 0x2dc   : > { %v1311_v46 = vpack.c.bf16 %v592_v44, %v591_v45 }
 0x2de   : > { %1312 = vmatprep.subr.bf16.mxu0 %v1311_v46 }
 0x2df   : > { %1314 = vmatpush3.bf16.msra.mxu0 %v1311_v46 }
 0x2e2   : > { %1258 = vmatmul.mubr.msk.f32.vlgmr.msra.gmra.mrb[4].mxu0 %vm373_vm0, %v610_v33 }
 0x2e3   : > { %1260 = vmatprep.mubr.msk.f32.mxu0 %vm373_vm0, %v611_v36 }
 0x2e6   : > { %1261 = vmatmul.mubr.msk.f32.gmra.mrb[6].mxu0 %vm373_vm0, %v612_v42 }
 0x2e7   : > { %1263 = vmatprep.mubr.msk.f32.mxu0 %vm373_vm0, %v613_v43  ;;  %v844_v43 = vlaneseq }
 0x2e9   : > { %v845_v44 = vshrl.u32 %v844_v43, 7 }
 0x2ea   : > { %1264 = vmatmul.mubr.msk.f32.gmra.mrb[8].mxu0 %vm373_vm0, %v614_v47 }
 0x2eb   : > { %1266 = vmatprep.mubr.msk.f32.mxu0 %vm373_vm0, %v615_v48  ;;  %v846_v45 = vsub.s32 0, %v845_v44 }
 0x2ee   : > { %1267 = vmatmul.mubr.msk.f32.gmra.mrb[10].mxu0 %vm373_vm0, %v616_v49 }
 0x3b5   : > { %v1259_v50 = vpop.f32.mrb[4].mxu0 }
 0x3b6   : > { %v757_v51 = vmul.f32 1.442695, %v1259_v50  ;;  %v716_v52 = vpop.f32.mrb[5].mxu0 }
 0x3b7   : > { %v755_v53 = vmul.f32 1.442695, %v716_v52  ;;  %v950_v52 = vld [vmem:[%s2020_s21 + $0x8] sm:$0xff] }
 0x3b8   : > { %1419 = vpow2.f32 %v757_v51 }
 0x3b9   : > { %1421 = vpow2.f32 %v755_v53  ;;  %v1262_v54 = vpop.f32.mrb[6].mxu0 }
 0x3ba   : > { %v761_v55 = vmul.f32 1.442695, %v1262_v54  ;;  %v726_v56 = vpop.f32.mrb[7].mxu0 }
 0x3bb   : > { %v759_v57 = vmul.f32 1.442695, %v726_v56  ;;  %v951_v56 = vld [vmem:[%s2020_s21 + $0x10] sm:$0xff] }
 0x3bc   : > { %1423 = vpow2.f32 %v761_v55 }
 0x3bd   : > { %1425 = vpow2.f32 %v759_v57  ;;  %v1265_v58 = vpop.f32.mrb[8].mxu0 }
 0x3be   : > { %v765_v59 = vmul.f32 1.442695, %v1265_v58  ;;  %v736_v60 = vpop.f32.mrb[9].mxu0 }
 0x3bf   : > { %v763_v61 = vmul.f32 1.442695, %v736_v60 }
 0x3c0   : > { %1427 = vpow2.f32 %v765_v59 }
 0x3c1   : > { %1429 = vpow2.f32 %v763_v61  ;;  %v1268_v62 = vpop.f32.mrb[10].mxu0 }
 0x3c2   : > { %v1420_v63 = vpop.eup %1419  ;;  %v769_v0 = vmul.f32 1.442695, %v1268_v62  ;;  %v746_v1 = vpop.f32.mrb[11].mxu0 }
 0x3c3   : > { %v1422_v2 = vpop.eup %1421  ;;  %v775_v3 = vsel %vm568_vm5, %v1420_v63, 0.0  ;;  %v767_v4 = vmul.f32 1.442695, %v746_v1 }
 0x3c4   : > { %776 = vadd.xlane.f32.xlu1 %v775_v3  ;;  %v772_v5 = vsel %vm568_vm5, %v1422_v2, 0.0  ;;  %v1315_v6 = vpack.c.bf16 %v1420_v63, %v1422_v2  ;;  %1431 = vpow2.f32 %v769_v0 }
 0x3c5   : > { %773 = vadd.xlane.f32.xlu0 %v772_v5  ;;  %1433 = vpow2.f32 %v767_v4 }
 0x3c6   : > { %v1424_v7 = vpop.eup %1423  ;;  %1316 = vmatprep.subr.bf16.mxu1 %v1315_v6 }
 0x3c7   : > { %v1426_v8 = vpop.eup %1425  ;;  %1318 = vmatpush3.bf16.msra.mxu1 %v1315_v6  ;;  %v781_v9 = vsel %vm568_vm5, %v1424_v7, 0.0 }
 0x3c8   : > { %v1319_v10 = vpack.c.bf16 %v1424_v7, %v1426_v8  ;;  %v778_v14 = vsel %vm568_vm5, %v1426_v8, 0.0 }
 0x3c9   : > { %782 = vadd.xlane.f32.xlu0 %v781_v9 }
 0x3ca   : > { %v1428_v11 = vpop.eup %1427  ;;  %1320 = vmatprep.subr.bf16.mxu1 %v1319_v10 }
 0x3cb   : > { %v1430_v12 = vpop.eup %1429  ;;  %1322 = vmatpush3.bf16.msra.mxu1 %v1319_v10  ;;  %v787_v13 = vsel %vm568_vm5, %v1428_v11, 0.0 }
 0x3cc   : > { %788 = vadd.xlane.f32.xlu1 %v787_v13  ;;  %v1323_v15 = vpack.c.bf16 %v1428_v11, %v1430_v12  ;;  %v784_v17 = vsel %vm568_vm5, %v1430_v12, 0.0 }
 0x3cd   : > { %779 = vadd.xlane.f32.xlu0 %v778_v14 }
 0x3ce   : > { %v1432_v16 = vpop.eup %1431  ;;  %1324 = vmatprep.subr.bf16.mxu1 %v1323_v15 }
 0x3cf   : > { %v1434_v18 = vpop.eup %1433  ;;  %1326 = vmatpush3.bf16.msra.mxu1 %v1323_v15  ;;  %v793_v19 = vsel %vm568_vm5, %v1432_v16, 0.0 }
 0x3d0   : > { %794 = vadd.xlane.f32.xlu1 %v793_v19  ;;  %v1327_v20 = vpack.c.bf16 %v1432_v16, %v1434_v18  ;;  %v790_v21 = vsel %vm568_vm5, %v1434_v18, 0.0 }
 0x3d1   : > { %785 = vadd.xlane.f32.xlu0 %v784_v17 }
 0x3d2   : > { %1328 = vmatprep.subr.bf16.mxu1 %v1327_v20 }
 0x3d3   : > { %1330 = vmatpush3.bf16.msra.mxu1 %v1327_v20 }
 0x3d5   : > { %791 = vadd.xlane.f32.xlu0 %v790_v21 }
 0x451   : > { %v777_v25 = vpop.xlane.xlu1 %776 }
 0x452   : > { %v774_v23 = vpop.xlane.xlu0 %773 }
 0x453   : > { %1435 = vrcp.f32 %v774_v23 }
 0x454   : > { %1437 = vrcp.f32 %v777_v25 }
 0x456   : > { %v783_v28 = vpop.xlane.xlu0 %782 }
 0x459   : > { %v789_v33 = vpop.xlane.xlu1 %788 }
 0x45a   : > { %v780_v29 = vpop.xlane.xlu0 %779 }
 0x45b   : > { %1439 = vrcp.f32 %v780_v29 }
 0x45c   : > { %1441 = vrcp.f32 %v783_v28 }
 0x45d   : > { %v1436_v30 = vpop.eup %1435  ;;  %v795_v39 = vpop.xlane.xlu1 %794 }
 0x45e   : > { %812 = vxpose.xlu0.b32.start [1/8] (short) (narrow) %v1436_v30, 8  ;;  %v786_v31 = vpop.xlane.xlu0 %785  ;;  %v1438_v32 = vpop.eup %1437 }
 0x45f   : > { %1443 = vrcp.f32 %v786_v31 }
 0x460   : > { %1445 = vrcp.f32 %v789_v33 }
 0x462   : > { %813 = vxpose.xlu0.b32.cont [2/8] (short) (narrow) %v1438_v32, 8  ;;  %v792_v35 = vpop.xlane.xlu0 %791 }
 0x463   : > { %1447 = vrcp.f32 %v792_v35 }
 0x464   : > { %1449 = vrcp.f32 %v795_v39 }
 0x465   : > { %v1440_v34 = vpop.eup %1439 }
 0x466   : > { %814 = vxpose.xlu0.b32.cont [3/8] (short) (narrow) %v1440_v34, 8  ;;  %v1442_v36 = vpop.eup %1441 }
 0x469   : > { %v1444_v38 = vpop.eup %1443 }
 0x46a   : > { %815 = vxpose.xlu0.b32.cont [4/8] (short) (narrow) %v1442_v36, 8  ;;  %v1446_v40 = vpop.eup %1445 }
 0x46d   : > { %v1448_v41 = vpop.eup %1447 }
 0x46e   : > { %816 = vxpose.xlu0.b32.cont [5/8] (short) (narrow) %v1444_v38, 8  ;;  %v1450_v42 = vpop.eup %1449 }
 0x472   : > { %817 = vxpose.xlu0.b32.cont [6/8] (short) (narrow) %v1446_v40, 8 }
 0x476   : > { %818 = vxpose.xlu0.b32.cont [7/8] (short) (narrow) %v1448_v41, 8 }
 0x47a   : > { %819 = vxpose.xlu0.b32.end [8/8] (short) (narrow) %v1450_v42, 8 }
 0x4de   : > { %v828_v46 = vpop.trf.xlu0 }
 0x4df   : > { %v847_v47 = vrot.slane %v828_v46, %v846_v45 }
 0x4e1   : > { %v849_v48 = vmul.f32 %v847_v47, %v1985_v24  ;;  %v848_v49 = vmul.f32 %v847_v47, %v1981_v22  ;;  %v850_v50 = vmul.f32 %v847_v47, %v1989_v26  ;;  %v851_v51 = vmul.f32 %v847_v47, %v1992_v27  ;;  %v949_v24 = vld [vmem:[%s2020_s21] sm:$0xff]  ;;  %v952_v26 = vld [vmem:[%s2020_s21 + $0x18] sm:$0xff] }
 0x4e3   : > { %1285 = vmatprep.mubr.msk.f32.mxu1 %vm568_vm5, %v848_v49 }
 0x4e4   : > { %1286 = vmatmul.mubr.msk.f32.vlgmr.msra.gmra.mrb[4].mxu1 %vm568_vm5, %v849_v48 }
 0x4e5   : > { %1288 = vmatprep.mubr.msk.f32.mxu1 %vm568_vm5, %v850_v50 }
 0x4e8   : > { %1289 = vmatmul.mubr.msk.f32.gmra.mrb[6].mxu1 %vm568_vm5, %v851_v51 }
 0x5b7   : > { %v1287_v53 = vpop.f32.mrb[4].mxu1 }
 0x5b8   : > { %v954_v22 = vadd.f32 %v1287_v53, %v950_v52  ;;  %v930_v54 = vpop.f32.mrb[5].mxu1 }
 0x5b9   : > { %v953_v55 = vadd.f32 %v949_v24, %v930_v54 }
 0x5ba   : > { %958 = vst.msk [vmem:[%s2020_s21 + $0x8] sm:$0xff] %vm568_vm5, %v954_v22 }
 0x5bb   : > { %957 = vst.msk [vmem:[%s2020_s21] sm:$0xff] %vm568_vm5, %v953_v55  ;;  %v1290_v27 = vpop.f32.mrb[6].mxu1 }
 0x5bc   : > { %v956_v57 = vadd.f32 %v1290_v27, %v952_v26  ;;  %v940_v58 = vpop.f32.mrb[7].mxu1 }
 0x5bd   : > { %v955_v59 = vadd.f32 %v951_v56, %v940_v58 }
 0x5be   : > { %960 = vst.msk [vmem:[%s2020_s21 + $0x18] sm:$0xff] %vm568_vm5, %v956_v57 }
 0x5bf   : > { %959 = vst.msk [vmem:[%s2020_s21 + $0x10] sm:$0xff] %vm568_vm5, %v955_v59 }
 0x5c1   : > { %v965_v60 = vld [vmem:[%s2020_s21 + $0x8] sm:$0xff] }
 0x5c2   : > { %vm969_vm6 = vcmp.ne.f32.partialorder %v965_v60, %v965_v60  ;;  %v964_v61 = vld [vmem:[%s2020_s21] sm:$0xff] }
 0x5c3   : > { %v973_v62 = vsel %vm969_vm6, 0.0, %v965_v60  ;;  %vm968_vm7 = vcmp.ne.f32.partialorder %v964_v61, %v964_v61 }
 0x5c4   : > { %977 = vst.msk [vmem:[%s2020_s21 + $0x8] sm:$0xff] %vm568_vm5, %v973_v62  ;;  %v972_v63 = vsel %vm968_vm7, 0.0, %v964_v61 }
 0x5c5   : > { %976 = vst.msk [vmem:[%s2020_s21] sm:$0xff] %vm568_vm5, %v972_v63  ;;  %v967_v0 = vld [vmem:[%s2020_s21 + $0x18] sm:$0xff] }
 0x5c6   : > { %vm971_vm8 = vcmp.ne.f32.partialorder %v967_v0, %v967_v0  ;;  %v966_v1 = vld [vmem:[%s2020_s21 + $0x10] sm:$0xff] }
 0x5c7   : > { %v975_v2 = vsel %vm971_vm8, 0.0, %v967_v0  ;;  %vm970_vm9 = vcmp.ne.f32.partialorder %v966_v1, %v966_v1 }
 0x5c8   : > { %979 = vst.msk [vmem:[%s2020_s21 + $0x18] sm:$0xff] %vm568_vm5, %v975_v2  ;;  %v974_v3 = vsel %vm970_vm9, 0.0, %v966_v1 }
 0x5c9   : > { %978 = vst.msk [vmem:[%s2020_s21 + $0x10] sm:$0xff] %vm568_vm5, %v974_v3 }
 0x5ca   : > { %1582 = shalt.err (!%p1579_p8)
}
 0x5cb   : > { %s1583_s22 = scalar_lea.hbm %s2063_s2, 512  ;;  %s1587_s26 = scalar_lea.hbm %s2122_s4, 1024 }
 0x5cc   : > { %p1584_p12 = scmp.ne.s32.totalorder %s2063_s2, %s1583_s22  ;;  %p1588_p11 = scmp.lt.u32.totalorder %s2063_s2, %s2122_s4 }
 0x5cd   : > { %p1589_p13 = scmp.lt.u32.totalorder %s1587_s26, %s1583_s22  ;;  %p1591_p9 = scmp.lt.u32.totalorder %s1583_s22, %s2063_s2 }
 0x5ce   : > { %p1585_p0 = pnand %p1584_p12, %p2156_p1 }
 0x5cf   : > { %p1590_p5 = por %p1589_p13, %p1588_p11 }
 0x5d0   : > { %p1586_p3 = pneg %p1585_p0 }
 0x5d1   : > { %p1592_p10 = por %p1591_p9, %p1590_p5 }
 0x5d3   : > { %p1593_p7 = pnand %p1592_p10, %p1586_p3 }
 0x5d5   : > { %1596 = shalt.err (!%p1593_p7)
}
 0x5d6   : > { %s1673_s27 = smov 128   ;;  %s1674_s29 = smov 8  }
 0x5d7   : > { %1341 = dma.vmem_to_hbm [thread:$0]  (%p2156_p1), %s2065_s0, 512, %s2063_s2, %s981_s18, %s1673_s27, %s1673_s27, %s1674_s29  }
 0x5d8 PF: > { %s1009_s13 = sand.u32 1, %s1643_s15   ;;  %p2157_p4 = scmp.ne.s32.totalorder %s2137_s24, 0 }
 0x5d9   : > { %p2158_p6 = scmp.ge.s32.totalorder %s1663_s20, 2  ;;  %s1010_s14 = scalar_lea.sflag [#allocation5], %s1009_s13 }
 0x5db   : > { %p1358_p2 = pnand %p2158_p6, %p2157_p4 }
 0x5dd   : > { %1638 = dma.done.wait (!%p1358_p2), %s1010_s14, 512  }
 0x5de   : > { %1640 = vsyncadd (!%p1358_p2), %s1010_s14, 4294966784  ;;  %s26_s20 = sadd.s32 1, %s1663_s20   ;;  %s2159_s21 = sld [smem:[#allocation19_spill]] }
 0x5df   : > { %p23_p8 = scmp.ge.s32.totalorder %s26_s20, 4   ;;  %s2160_s18 = sld [smem:[#allocation17_spill]] }
 0x5e0   : > { %s2161_s19 = sld [smem:[#allocation18_spill]]  ;;  %s2162_s15 = smov %s1647_s16 }
 0x5e1   : > { %s2163_s16 = smov %s1651_s17  ;;  %25 = sbr.rel (!%p23_p8) target bundleno = 13 (0xd), region = 119 }
 0x5e4   : > { %s2164_s17 = smov %s2159_s21 }
 0x5e8   :  { %1015 = vsyncpa [#allocation4], 1 }
 0x5e9   :  { %1017 = vsyncpa [#allocation4 + $0x1], 1 }
 0x5ea   :  { %1018 = vsyncpa [#allocation7], 1 }
 0x5eb   :  { %1020 = vsyncpa [#allocation7 + $0x1], 1 }
 0x5ec   :  { %1021 = vsyncpa [#allocation10], 1 }
 0x5ed   :  { %1023 = vsyncpa [#allocation10 + $0x1], 1 }
 0x5ee   :  { %1024 = vsyncpa [#allocation5], 1 }
 0x5ef   :  { %1026 = vsyncpa [#allocation5 + $0x1], 1 }

</bundles_post_ra>
